<compile_context>
chip_gen: v7x
topology: tpu7x:2x2x1
jax: 0.10.0
libtpu: 0.0.40
codegen_flags: <defaults>
</compile_context>

<pallas_src>
import jax
import jax.numpy as jnp
from jax.experimental import pallas as pl
from jax.experimental.pallas import tpu as pltpu


def _round_up(v, m):
    return (v + m - 1) // m * m


def _pick_sx_tile(sx_p, max_tile=512):
    """Largest multiple-of-8 divisor of sx_p not exceeding max_tile."""
    if sx_p <= max_tile:
        return sx_p
    best = 8
    for t in range(8, max_tile + 1, 8):
        if sx_p % t == 0:
            best = t
    return best


def _pick_batch_block(B, tx, sy_p, d, io_itemsize,
                      budget_bytes=24 * 1024 * 1024):
    """Largest divisor of B whose per-step VMEM footprint fits the budget
    (conservative: double-buffered x/y/out, double-buffered weight)."""
    def footprint(bb):
        io = 2 * bb * ((tx * d + sy_p * d) * io_itemsize + tx * sy_p * 4)
        w = 2 * d * d * io_itemsize + 6 * d * io_itemsize
        return io + w
    best = 1
    for bb in range(1, B + 1):
        if B % bb == 0 and footprint(bb) <= budget_bytes:
            best = bb
    return best


def _make_biaffine_kernel(bias_x: bool, bias_y: bool):
    """Build a kernel statically specialized on the bias flags.

    Ref order: x, y, w00, [wrow if bias_x], [wcol if bias_y],
               [w11 if bias_x and bias_y], out
    Shapes:    x:(Bb,Tx,D) y:(Bb,Sy,D) w00:(1,D,D) wrow/wcol:(1,1,D)
               w11:(1,1,1) f32          out:(Bb,1,Tx,Sy)
    """
    has_corner = bias_x and bias_y

    def kernel(*refs):
        x_ref, y_ref, w00_ref = refs[0], refs[1], refs[2]
        idx = 3
        wrow_ref = wcol_ref = w11_ref = None
        if bias_x:
            wrow_ref = refs[idx]; idx += 1
        if bias_y:
            wcol_ref = refs[idx]; idx += 1
        if has_corner:
            w11_ref = refs[idx]; idx += 1
        o_ref = refs[idx]

        x = x_ref[...]                       # (Bb, Tx, D)
        y = y_ref[...]                       # (Bb, Sy, D)
        w00 = w00_ref[0]                     # (D, D)
        bb, tx, d = x.shape

        # 1st MXU matmul: one big (Bb*Tx, D) x (D, D) product (fills the MXU M
        # dim even when Tx is small), then fold the bias_x row of the weight.
        x2 = x.reshape(bb * tx, d)
        xw = jnp.dot(x2, w00, preferred_element_type=jnp.float32)   # (Bb*Tx, D) f32
        if bias_x:
            xw = xw + wrow_ref[0].astype(jnp.float32)               # (1, D) broadcast
        xw = xw.astype(y.dtype).reshape(bb, tx, d)

        # 2nd MXU matmul: contraction on the LAST dim of both operands -> no
        # transposed copy of y is materialized (transposed-RHS dot_general).
        s = jnp.einsum('bxd,byd->bxy', xw, y,
                       preferred_element_type=jnp.float32)          # (Bb, Tx, Sy)

        if bias_y:
            # bias_y column (+ corner) term: per-(b, row) scalar; VPU/XLU side
            # work that hides under the MXU-bound matmuls.
            col = jnp.sum(x.astype(jnp.float32) *
                          wcol_ref[...].astype(jnp.float32),
                          axis=-1, keepdims=True)                   # (Bb, Tx, 1)
            if has_corner:
                col = col + w11_ref[...]                            # (1,1,1) broadcast
            s = s + col

        o_ref[...] = s[:, None].astype(o_ref.dtype)

    return kernel


def biaffine_pallas(x, y, weight, bias_x=True, bias_y=True, *,
                    compute_dtype=None, batch_block=None):
    """Biaffine forward.
    x: [B, Sx, n_in], y: [B, Sy, n_in], weight: [n_out, n_in+bias_x, n_in+bias_y].
    compute_dtype: optionally run the matmuls in e.g. jnp.bfloat16 (f32 accum)."""
    B, Sx, n_in = x.shape
    B2, Sy, n_in_y = y.shape
    assert B2 == B and n_in_y == n_in, "x / y batch or feature dims disagree"
    n_out, Dx, Dy = weight.shape
    assert Dx == n_in + int(bias_x) and Dy == n_in + int(bias_y), (
        f"weight must be (n_out, n_in+bias_x, n_in+bias_y) = "
        f"({n_out}, {n_in + int(bias_x)}, {n_in + int(bias_y)}), got {weight.shape}")

    out_dtype = x.dtype
    D = n_in
    has_corner = bias_x and bias_y

    # Split the weight: core (D, D) block plus the bias row / column / corner
    # (folded algebraically in the kernel -> no ones-concat copies of x / y).
    w00 = weight[:, :D, :D]                                          # (n_out, D, D)
    wrow = weight[:, D, :D].reshape(n_out, 1, D) if bias_x else None
    wcol = weight[:, :D, D].reshape(n_out, 1, D) if bias_y else None
    w11 = (weight[:, D, D].reshape(n_out, 1, 1).astype(jnp.float32)
           if has_corner else None)

    if compute_dtype is not None:
        x = x.astype(compute_dtype)
        y = y.astype(compute_dtype)
        w00 = w00.astype(compute_dtype)
        wrow = wrow.astype(compute_dtype) if wrow is not None else None
        wcol = wcol.astype(compute_dtype) if wcol is not None else None

    # Layout alignment: Sy -> multiple of 128 (unmasked full-lane output
    # stores), Sx -> multiple of 8 (sublane).  No-ops when already aligned;
    # padded rows/cols are sliced back off below.
    Sy_p = _round_up(max(Sy, 1), 128)
    Sx_p = _round_up(max(Sx, 1), 8)
    if Sy_p != Sy:
        y = jnp.pad(y, ((0, 0), (0, Sy_p - Sy), (0, 0)))
    if Sx_p != Sx:
        x = jnp.pad(x, ((0, 0), (0, Sx_p - Sx), (0, 0)))

    # Tile long Sx (keeps per-step VMEM inside v7x's 64 MiB); fold batch items
    # into one step when Sx is small so the MXU M dim is occupied.
    Tx = _pick_sx_tile(Sx_p)
    nTx = Sx_p // Tx
    io_itemsize = jnp.dtype(x.dtype).itemsize
    if batch_block is None:
        batch_block = _pick_batch_block(B, Tx, Sy_p, D, io_itemsize)
    Bb = batch_block
    assert B % Bb == 0, "batch_block must divide the batch size"
    nB = B // Bb

    # Weight varies only on the outermost axis -> each (D, D) core block is
    # DMA'd exactly once per n_out step; x / y re-fetched n_out times (n_out is
    # typically 1 for this module).
    grid = (n_out, nB, nTx)

    inputs = [x, y, w00]
    in_specs = [
        pl.BlockSpec((Bb, Tx, D),   lambda o, b, t: (b, t, 0)),   # x
        pl.BlockSpec((Bb, Sy_p, D), lambda o, b, t: (b, 0, 0)),   # y
        pl.BlockSpec((1, D, D),     lambda o, b, t: (o, 0, 0)),   # W core
    ]
    if bias_x:
        inputs.append(wrow)
        in_specs.append(pl.BlockSpec((1, 1, D), lambda o, b, t: (o, 0, 0)))
    if bias_y:
        inputs.append(wcol)
        in_specs.append(pl.BlockSpec((1, 1, D), lambda o, b, t: (o, 0, 0)))
    if has_corner:
        inputs.append(w11)
        in_specs.append(pl.BlockSpec((1, 1, 1), lambda o, b, t: (o, 0, 0)))

    flops = 2 * B * n_out * (Sx_p * D * D + Sx_p * Sy_p * D)
    bytes_accessed = (x.size * io_itemsize + y.size * io_itemsize
                      + int(weight.size) * jnp.dtype(weight.dtype).itemsize
                      + B * n_out * Sx_p * Sy_p * jnp.dtype(out_dtype).itemsize)
    cost = pl.CostEstimate(flops=int(flops), transcendentals=0,
                           bytes_accessed=int(bytes_accessed))

    out = pl.pallas_call(
        _make_biaffine_kernel(bias_x, bias_y),
        out_shape=jax.ShapeDtypeStruct((B, n_out, Sx_p, Sy_p), out_dtype),
        grid_spec=pltpu.PrefetchScalarGridSpec(
            num_scalar_prefetch=0,
            grid=grid,
            in_specs=in_specs,
            out_specs=pl.BlockSpec((Bb, 1, Tx, Sy_p),
                                   lambda o, b, t: (b, o, t, 0)),
        ),
        compiler_params=pltpu.CompilerParams(
            dimension_semantics=("parallel", "parallel", "parallel"),
            vmem_limit_bytes=64 * 1024 * 1024),
        cost_estimate=cost,
    )(*inputs)

    out = out[:, :, :Sx, :Sy]
    # torch: s.squeeze(1) -> only drops the n_out axis when it is size 1
    if n_out == 1:
        out = out[:, 0]
    return out


def _reference(x, y, weight, bias_x, bias_y):
    """Exact PyTorch semantics in plain JAX."""
    xb = jnp.concatenate([x, jnp.ones_like(x[..., :1])], -1) if bias_x else x
    yb = jnp.concatenate([y, jnp.ones_like(y[..., :1])], -1) if bias_y else y
    s = jnp.einsum('bxi,oij,byj->boxy', xb, weight, yb)
    if s.shape[1] == 1:          # torch .squeeze(1)
        s = s[:, 0]
    return s


if __name__ == "__main__":
    key = jax.random.PRNGKey(0)

    # Small shapes consistent with the module; second config exercises the
    # padding path, n_out > 1 and a disabled bias flag.
    configs = [
        # B, Sx, Sy, n_in, n_out, bias_x, bias_y
        (2, 8, 8, 32, 1, True, True),
        (2, 5, 7, 32, 2, True, False),
    ]

    for (B, Sx, Sy, n_in, n_out, bx, by) in configs:
        key, kx, ky, kw = jax.random.split(key, 4)
        x = jax.random.normal(kx, (B, Sx, n_in), dtype=jnp.float32)
        y = jax.random.normal(ky, (B, Sy, n_in), dtype=jnp.float32)
        # Module's reset_parameters() zeros the weight; use a deterministic
        # non-zero init here so the correctness check is meaningful.
        weight = 0.02 * jax.random.normal(
            kw, (n_out, n_in + int(bx), n_in + int(by)), dtype=jnp.float32)

        out = jax.block_until_ready(
            biaffine_pallas(x, y, weight, bias_x=bx, bias_y=by))
        ref = _reference(x, y, weight, bx, by)

        assert out.shape == ref.shape, (out.shape, ref.shape)
        assert jnp.allclose(out, ref, atol=1e-5, rtol=1e-5), \
            f"mismatch vs reference for config {(B, Sx, Sy, n_in, n_out, bx, by)}"

    print("KERNEL_OK")
</pallas_src>

<mosaic_0001>
module attributes {stable_mosaic.version = 11 : i64} {
  func.func @kernel(%arg0: i32, %arg1: i32, %arg2: i32, %arg3: memref<2x8x32xf32, #tpu.memory_space<vmem>>, %arg4: memref<2x128x32xf32, #tpu.memory_space<vmem>>, %arg5: memref<1x32x32xf32, #tpu.memory_space<vmem>>, %arg6: memref<1x1x32xf32, #tpu.memory_space<vmem>>, %arg7: memref<1x1x32xf32, #tpu.memory_space<vmem>>, %arg8: memref<1x1x1xf32, #tpu.memory_space<vmem>>, %arg9: memref<2x1x8x128xf32, #tpu.memory_space<vmem>>) attributes {dimension_semantics = [#tpu.dimension_semantics<parallel>, #tpu.dimension_semantics<parallel>, #tpu.dimension_semantics<parallel>], iteration_bounds = array<i64: 1, 1, 1>, scalar_prefetch = 0 : i64, scratch_operands = 0 : i64, tpu.core_type = #tpu.core_type<tc>, window_params = [{transform_indices = @transform_0, window_bounds = array<i64: 2, 8, 32>}, {transform_indices = @transform_1, window_bounds = array<i64: 2, 128, 32>}, {transform_indices = @transform_2, window_bounds = array<i64: 1, 32, 32>}, {transform_indices = @transform_3, window_bounds = array<i64: 1, 1, 32>}, {transform_indices = @transform_4, window_bounds = array<i64: 1, 1, 32>}, {transform_indices = @transform_5, window_bounds = array<i64: 1, 1, 1>}, {transform_indices = @transform_6, window_bounds = array<i64: 2, 1, 8, 128>}]} {
    %c0 = arith.constant 0 : index
    %c0_0 = arith.constant 0 : index
    %c0_1 = arith.constant 0 : index
    %0 = vector.load %arg3[%c0, %c0_0, %c0_1] : memref<2x8x32xf32, #tpu.memory_space<vmem>>, vector<2x8x32xf32>
    %c0_2 = arith.constant 0 : index
    %c0_3 = arith.constant 0 : index
    %c0_4 = arith.constant 0 : index
    %1 = vector.load %arg4[%c0_2, %c0_3, %c0_4] : memref<2x128x32xf32, #tpu.memory_space<vmem>>, vector<2x128x32xf32>
    %c0_5 = arith.constant 0 : index
    %c0_6 = arith.constant 0 : index
    %c0_7 = arith.constant 0 : index
    %2 = vector.load %arg5[%c0_5, %c0_6, %c0_7] : memref<1x32x32xf32, #tpu.memory_space<vmem>>, vector<1x32x32xf32>
    %3 = vector.shape_cast %2 : vector<1x32x32xf32> to vector<32x32xf32>
    %4 = vector.shape_cast %0 : vector<2x8x32xf32> to vector<16x32xf32>
    %cst = arith.constant dense<0.000000e+00> : vector<16x32xf32>
    %5 = tpu.matmul %4, %3, %cst {dimension_numbers = #tpu.dot_dimension_numbers<[1], [0], [0], [1], [0, 0, 1, 1], [], []>} : vector<16x32xf32>, vector<32x32xf32>, vector<16x32xf32> -> vector<16x32xf32>
    %c0_8 = arith.constant 0 : index
    %c0_9 = arith.constant 0 : index
    %c0_10 = arith.constant 0 : index
    %6 = vector.load %arg6[%c0_8, %c0_9, %c0_10] : memref<1x1x32xf32, #tpu.memory_space<vmem>>, vector<1x1x32xf32>
    %7 = vector.shape_cast %6 : vector<1x1x32xf32> to vector<1x32xf32>
    %8 = vector.broadcast %7 : vector<1x32xf32> to vector<16x32xf32>
    %9 = arith.addf %5, %8 : vector<16x32xf32>
    %10 = vector.shape_cast %9 : vector<16x32xf32> to vector<2x8x32xf32>
    "tpu.trace_start"() <{level = 10 : i32, message = "bxd,byd->bxy"}> : () -> ()
    %cst_11 = arith.constant dense<0.000000e+00> : vector<2x8x128xf32>
    %11 = tpu.matmul %10, %1, %cst_11 {dimension_numbers = #tpu.dot_dimension_numbers<[2], [2], [1], [1], [0, 0, 0, 1, 1, 1], [0], [0]>} : vector<2x8x32xf32>, vector<2x128x32xf32>, vector<2x8x128xf32> -> vector<2x8x128xf32>
    "tpu.trace_stop"() : () -> ()
    %c0_12 = arith.constant 0 : index
    %c0_13 = arith.constant 0 : index
    %c0_14 = arith.constant 0 : index
    %12 = vector.load %arg7[%c0_12, %c0_13, %c0_14] : memref<1x1x32xf32, #tpu.memory_space<vmem>>, vector<1x1x32xf32>
    %13 = vector.broadcast %12 : vector<1x1x32xf32> to vector<2x8x32xf32>
    %14 = arith.mulf %0, %13 : vector<2x8x32xf32>
    %cst_15 = arith.constant dense<0.000000e+00> : vector<2x8xf32>
    %15 = vector.multi_reduction <add>, %14, %cst_15 [2] : vector<2x8x32xf32> to vector<2x8xf32>
    %16 = vector.shape_cast %15 : vector<2x8xf32> to vector<2x8x1xf32>
    %c0_16 = arith.constant 0 : index
    %c0_17 = arith.constant 0 : index
    %c0_18 = arith.constant 0 : index
    %17 = vector.load %arg8[%c0_16, %c0_17, %c0_18] : memref<1x1x1xf32, #tpu.memory_space<vmem>>, vector<1x1x1xf32>
    %18 = vector.broadcast %17 : vector<1x1x1xf32> to vector<2x8x1xf32>
    %19 = arith.addf %16, %18 : vector<2x8x1xf32>
    %20 = vector.broadcast %19 : vector<2x8x1xf32> to vector<2x8x128xf32>
    %21 = arith.addf %11, %20 : vector<2x8x128xf32>
    %22 = vector.shape_cast %21 : vector<2x8x128xf32> to vector<2x1x8x128xf32>
    %c0_19 = arith.constant 0 : index
    %c0_20 = arith.constant 0 : index
    %c0_21 = arith.constant 0 : index
    %c0_22 = arith.constant 0 : index
    %23 = vector.load %arg9[%c0_19, %c0_20, %c0_21, %c0_22] : memref<2x1x8x128xf32, #tpu.memory_space<vmem>>, vector<2x1x8x128xf32>
    tpu.vector_store %arg9[%c0_19, %c0_20, %c0_21, %c0_22], %22 {strides = array<i32>} : memref<2x1x8x128xf32, #tpu.memory_space<vmem>>, vector<2x1x8x128xf32>,
    return
  }
  func.func @transform_0(%arg0: i32, %arg1: i32, %arg2: i32) -> (i32, i32, i32) {
    %c0_i32 = arith.constant 0 : i32
    %c0_i32_0 = arith.constant 0 : i32
    return %arg1, %arg2, %c0_i32 : i32, i32, i32
  }
  func.func @transform_1(%arg0: i32, %arg1: i32, %arg2: i32) -> (i32, i32, i32) {
    %c0_i32 = arith.constant 0 : i32
    %c0_i32_0 = arith.constant 0 : i32
    %c0_i32_1 = arith.constant 0 : i32
    return %arg1, %c0_i32, %c0_i32_0 : i32, i32, i32
  }
  func.func @transform_2(%arg0: i32, %arg1: i32, %arg2: i32) -> (i32, i32, i32) {
    %c0_i32 = arith.constant 0 : i32
    %c0_i32_0 = arith.constant 0 : i32
    %c0_i32_1 = arith.constant 0 : i32
    return %arg0, %c0_i32, %c0_i32_0 : i32, i32, i32
  }
  func.func @transform_3(%arg0: i32, %arg1: i32, %arg2: i32) -> (i32, i32, i32) {
    %c0_i32 = arith.constant 0 : i32
    %c0_i32_0 = arith.constant 0 : i32
    %c0_i32_1 = arith.constant 0 : i32
    return %arg0, %c0_i32, %c0_i32_0 : i32, i32, i32
  }
  func.func @transform_4(%arg0: i32, %arg1: i32, %arg2: i32) -> (i32, i32, i32) {
    %c0_i32 = arith.constant 0 : i32
    %c0_i32_0 = arith.constant 0 : i32
    %c0_i32_1 = arith.constant 0 : i32
    return %arg0, %c0_i32, %c0_i32_0 : i32, i32, i32
  }
  func.func @transform_5(%arg0: i32, %arg1: i32, %arg2: i32) -> (i32, i32, i32) {
    %c0_i32 = arith.constant 0 : i32
    %c0_i32_0 = arith.constant 0 : i32
    %c0_i32_1 = arith.constant 0 : i32
    return %arg0, %c0_i32, %c0_i32_0 : i32, i32, i32
  }
  func.func @transform_6(%arg0: i32, %arg1: i32, %arg2: i32) -> (i32, i32, i32, i32) {
    %c0_i32 = arith.constant 0 : i32
    %c0_i32_0 = arith.constant 0 : i32
    return %arg1, %arg0, %arg2, %c0_i32 : i32, i32, i32, i32
  }
}

</mosaic_0001>

<bundles_post_ra>
// kernel: tpu_custom_call.1
= control target key start
LH: loop header
LB: loop body
LE: loop exit
PB: predicated region body
PF: predicated region fallthrough
CT: control target
= control target key end

     0   :  { %s1109_s0 = inlined_call_operand.hbm [shape: f32[2,8,32], index: 0, kind: input, shape index: {}]   ;;  %s1110_s1 = inlined_call_operand.hbm [shape: f32[2,128,32], index: 1, kind: input, shape index: {}]   ;;  %s1111_s2 = inlined_call_operand.hbm [shape: f32[1,32,32], index: 2, kind: input, shape index: {}]   ;;  %s1112_s3 = inlined_call_operand.hbm [shape: f32[1,1,32], index: 3, kind: input, shape index: {}]   ;;  %s1113_s4 = inlined_call_operand.hbm [shape: f32[1,1,32], index: 4, kind: input, shape index: {}]   ;;  %s1114_s5 = inlined_call_operand.<no memory space> [shape: f32[1,1,1], index: 5, kind: input, shape index: {}]   ;;  %s1115_s6 = inlined_call_operand.hbm [shape: f32[2,1,8,128], index: 6, kind: output, shape index: {}]  }
   0x1   :  { %v11_v0 = vstv %s1114_s5 }
   0x2   :  { %12 = vst [vmem:[#allocation2] sm:$0x1] %v11_v0 }
   0x3   :  { %13 = vsyncpa [#allocation4], 0 }
   0x4   :  { %14 = vsyncpa [#allocation7], 0 }
   0x5   :  { %15 = vsyncpa [#allocation10], 0 }
   0x6   :  { %16 = vsyncpa [#allocation5], 0  ;;  %s900_s23 = smov [#allocation6]   ;;  %s901_s25 = smov [#allocation9]  }
   0x7   :  { %s34_s24 = sshll.u32 %s900_s23, 4  ;;  %s59_s26 = sshll.u32 %s901_s25, 4  ;;  %s35_s24 = int_to_ptr.vmem [resolvable:$true] %s34_s24  ;;  %s950_s26 = int_to_ptr.vmem [resolvable:$true] %s59_s26 }
   0x8   :  { %s760_s29 = scalar_lea.hbm %s1110_s1, 4096 }
   0x9   :  { %p761_p0 = scmp.ne.s32.totalorder %s1110_s1, %s760_s29  ;;  %p764_p1 = scmp.lt.u32.totalorder %s760_s29, %s1110_s1 }
   0xb   :  { %p766_p2 = pnand %p764_p1, %p761_p0 }
   0xd   :  { %769 = shalt.err (!%p766_p2)
}
   0xe   :  { %s770_s9 = scalar_lea.vmem %s35_s24, 4096  ;;  %p775_p4 = scmp.lt.s32.totalorder %s35_s24, %s35_s24 }
   0xf   :  { %p771_p3 = scmp.ne.s32.totalorder %s35_s24, %s770_s9  ;;  %p776_p5 = scmp.lt.s32.totalorder %s770_s9, %s770_s9 }
  0x11   :  { %p777_p6 = por %p776_p5, %p775_p4 }
  0x13   :  { %p778_p7 = pnand %p777_p6, %p771_p3 }
  0x15   :  { %781 = shalt.err (!%p778_p7)
}
  0x16   :  { %s902_s10 = smov 128   ;;  %s903_s11 = smov 8  }
  0x17   :  { %40 = dma.hbm_to_vmem [thread:$0]  %s1110_s1, 4096, %s35_s24, [#allocation7], %s902_s10, %s902_s10, %s903_s11  }
  0x18   :  { %s782_s16 = scalar_lea.hbm %s1112_s3, 16 }
  0x19   :  { %p783_p8 = scmp.ne.s32.totalorder %s1112_s3, %s782_s16  ;;  %p786_p9 = scmp.lt.u32.totalorder %s782_s16, %s1112_s3 }
  0x1b   :  { %p788_p10 = pnand %p786_p9, %p783_p8 }
  0x1d   :  { %791 = shalt.err (!%p788_p10)
}
  0x1e   :  { %s792_s21 = scalar_lea.vmem %s950_s26, 16  ;;  %s796_s1 = scalar_lea.vmem %s950_s26, 32 }
  0x1f   :  { %p793_p11 = scmp.ne.s32.totalorder %s950_s26, %s792_s21  ;;  %p797_p12 = scmp.lt.s32.totalorder %s950_s26, %s950_s26 }
  0x20   :  { %p798_p13 = scmp.lt.s32.totalorder %s796_s1, %s792_s21 }
  0x22   :  { %p799_p0 = por %p798_p13, %p797_p12 }
  0x24   :  { %p800_p1 = pnand %p799_p0, %p793_p11 }
  0x26   :  { %803 = shalt.err (!%p800_p1)
}
  0x27   :  { %62 = dma.hbm_to_vmem [thread:$0]  %s1112_s3, 16, %s950_s26, [#allocation10]  }
  0x28   :  { %s904_s24 = smov [#allocation3]   ;;  %s905_s27 = smov [#allocation8]  }
  0x29   :  { %s22_s25 = sshll.u32 %s904_s24, 4  ;;  %s46_s28 = sshll.u32 %s905_s27, 4  ;;  %s23_s25 = int_to_ptr.vmem [resolvable:$true] %s22_s25  ;;  %s985_s28 = int_to_ptr.vmem [resolvable:$true] %s46_s28 }
  0x2a   :  { %s804_s7 = scalar_lea.hbm %s1109_s0, 256 }
  0x2b   :  { %p805_p2 = scmp.ne.s32.totalorder %s1109_s0, %s804_s7  ;;  %p808_p3 = scmp.lt.u32.totalorder %s804_s7, %s1109_s0 }
  0x2d   :  { %p810_p4 = pnand %p808_p3, %p805_p2 }
  0x2f   :  { %813 = shalt.err (!%p810_p4)
}
  0x30   :  { %s814_s3 = scalar_lea.vmem %s23_s25, 256  ;;  %p819_p6 = scmp.lt.s32.totalorder %s23_s25, %s23_s25 }
  0x31   :  { %p815_p5 = scmp.ne.s32.totalorder %s23_s25, %s814_s3  ;;  %p820_p7 = scmp.lt.s32.totalorder %s814_s3, %s814_s3 }
  0x33   :  { %p821_p8 = por %p820_p7, %p819_p6 }
  0x35   :  { %p822_p9 = pnand %p821_p8, %p815_p5 }
  0x37   :  { %825 = shalt.err (!%p822_p9)
}
  0x38   :  { %28 = dma.hbm_to_vmem [thread:$0]  %s1109_s0, 256, %s23_s25, [#allocation4], %s902_s10, %s902_s10, %s903_s11  }
  0x39   :  { %s826_s16 = scalar_lea.hbm %s1111_s2, 512 }
  0x3a   :  { %p827_p10 = scmp.ne.s32.totalorder %s1111_s2, %s826_s16  ;;  %p830_p11 = scmp.lt.u32.totalorder %s826_s16, %s1111_s2 }
  0x3c   :  { %p832_p12 = pnand %p830_p11, %p827_p10 }
  0x3e   :  { %835 = shalt.err (!%p832_p12)
}
  0x3f   :  { %s836_s21 = scalar_lea.vmem %s985_s28, 512  ;;  %p841_p0 = scmp.lt.s32.totalorder %s985_s28, %s985_s28 }
  0x40   :  { %p837_p13 = scmp.ne.s32.totalorder %s985_s28, %s836_s21  ;;  %p842_p1 = scmp.lt.s32.totalorder %s836_s21, %s836_s21 }
  0x42   :  { %p843_p2 = por %p842_p1, %p841_p0 }
  0x44   :  { %p844_p3 = pnand %p843_p2, %p837_p13 }
  0x46   :  { %847 = shalt.err (!%p844_p3)
}
  0x47   :  { %52 = dma.hbm_to_vmem [thread:$0]  %s1111_s2, 512, %s985_s28, [#allocation7], %s902_s10, %s902_s10, %s903_s11  }
  0x48   :  { %s906_s22 = smov [#allocation11]   ;;  %s848_s27 = scalar_lea.hbm %s1113_s4, 16 }
  0x49   :  { %s69_s23 = sshll.u32 %s906_s22, 4  ;;  %p849_p4 = scmp.ne.s32.totalorder %s1113_s4, %s848_s27  ;;  %s70_s23 = int_to_ptr.vmem [resolvable:$true] %s69_s23 }
  0x4a   :  { %p852_p5 = scmp.lt.u32.totalorder %s848_s27, %s1113_s4 }
  0x4c   :  { %p854_p6 = pnand %p852_p5, %p849_p4 }
  0x4e   :  { %857 = shalt.err (!%p854_p6)
}
  0x4f   :  { %s858_s8 = scalar_lea.vmem %s70_s23, 16  ;;  %s862_s2 = scalar_lea.vmem %s70_s23, 32 }
  0x50   :  { %p859_p7 = scmp.ne.s32.totalorder %s70_s23, %s858_s8  ;;  %p863_p8 = scmp.lt.s32.totalorder %s70_s23, %s70_s23 }
  0x51   :  { %p864_p9 = scmp.lt.s32.totalorder %s862_s2, %s858_s8 }
  0x53   :  { %p865_p10 = por %p864_p9, %p863_p8 }
  0x55   :  { %p866_p11 = pnand %p865_p10, %p859_p7 }
  0x57   :  { %869 = shalt.err (!%p866_p11)
}
  0x58   :  { %72 = dma.hbm_to_vmem [thread:$0]  %s1113_s4, 16, %s70_s23, [#allocation10]  }
  0x59   :  { %892 = dma.done.wait [#allocation4], 256  }
  0x5a   :  { %893 = vsyncadd [#allocation4], 4294967040 }
  0x5b   :  { %894 = dma.done.wait [#allocation7], 4608  }
  0x5c   :  { %895 = vsyncadd [#allocation7], 4294962688 }
  0x5d   :  { %896 = dma.done.wait [#allocation10], 32  }
  0x5e   :  { %897 = vsyncadd [#allocation10], 4294967264  ;;  %v907_v1 = vmov 0.0|0.0   ;;  %vm135_vm0 = vcmask 261120   ;;  %v124_v2 = vld [vmem:[#allocation8] sm:$0xff]  ;;  %v125_v3 = vld [vmem:[#allocation8 + $0x8] sm:$0xff] }
  0x5f   :  { %682 = vmatprep.subr.bf16.mxu1 %v907_v1  ;;  %v126_v4 = vld [vmem:[#allocation8 + $0x10] sm:$0xff]  ;;  %v674_v5 = vpack.c.bf16 %v125_v3, %v124_v2  ;;  %v127_v6 = vld [vmem:[#allocation8 + $0x18] sm:$0xff]  ;;  %v517_v8 = vld [vmem:[#allocation11] ss:$0 sm:$0xff]  ;;  %vm908_vm2 = vmmov 0   ;;  %v909_v0 = vmov 0.0  }
  0x60   :  { %v90_v7 = vld [vmem:[#allocation3] sm:$0xff]  ;;  %v678_v9 = vpack.c.bf16 %v127_v6, %v126_v4  ;;  %v91_v11 = vld [vmem:[#allocation3 + $0x8] sm:$0xff]  ;;  %vm1038_vm1 = vmpackc.low %vm135_vm0, %vm135_vm0  ;;  %636 = vmatprep.mubr.msk.f32.mxu1 %vm908_vm2, %v909_v0  ;;  %v910_v2 = vmov 0   ;;  %s911_s4 = smov [#allocation12]  }
  0x61   :  { %601 = vmatprep.mubr.msk.f32.mxu0 %vm135_vm0, %v90_v7  ;;  %v224_v10 = vmul.f32 %v517_v8, %v90_v7  ;;  %675 = vmatprep.subr.bf16.mxu0 %v674_v5  ;;  %v225_v13 = vmul.f32 %v517_v8, %v91_v11  ;;  %v92_v14 = vld [vmem:[#allocation6] sm:$0xff]  ;;  %v93_v15 = vld [vmem:[#allocation6 + $0x8] sm:$0xff]  ;;  %v94_v19 = vld [vmem:[#allocation6 + $0x10] sm:$0xff]  ;;  %s500_s12 = sshll.u32 %s911_s4, 4  ;;  %s501_s12 = int_to_ptr.vmem [resolvable:$true] %s500_s12 }
  0x62   :  { %677 = vmatpush3.bf16.msra.mxu0 %v674_v5  ;;  %v683_v17 = vpack.c.bf16 %v93_v15, %v92_v14  ;;  %v95_v20 = vld [vmem:[#allocation6 + $0x18] sm:$0xff]  ;;  %v108_v21 = vld [vmem:[#allocation6 + $0x80] sm:$0xff]  ;;  %v109_v22 = vld [vmem:[#allocation6 + $0x88] sm:$0xff]  ;;  %758 = vset.pattern.permute.xlu1 %v910_v2  ;;  %s870_s3 = scalar_lea.vmem %s501_s12, 256  ;;  %p875_p13 = scmp.lt.s32.totalorder %s501_s12, %s501_s12 }
  0x63   :  { %v226_v16 = vsel %vm135_vm0, %v224_v10, 0.0  ;;  %679 = vmatprep.subr.bf16.mxu0 %v678_v9  ;;  %v229_v18 = vsel %vm135_vm0, %v225_v13, 0.0  ;;  %v687_v23 = vpack.c.bf16 %v95_v20, %v94_v19  ;;  %v715_v24 = vpack.c.bf16 %v109_v22, %v108_v21  ;;  %v96_v25 = vld [vmem:[#allocation6 + $0x20] sm:$0xff]  ;;  %v97_v26 = vld [vmem:[#allocation6 + $0x28] sm:$0xff]  ;;  %v110_v27 = vld [vmem:[#allocation6 + $0x90] sm:$0xff]  ;;  %759 = vset.pattern.permute.xlu0 %v910_v2  ;;  %p871_p12 = scmp.ne.s32.totalorder %s501_s12, %s870_s3  ;;  %p876_p0 = scmp.lt.s32.totalorder %s870_s3, %s870_s3 }
  0x64   :  { %227 = vadd.xlane.f32.xlu0 %v226_v16  ;;  %685 = vmatpush3.bf16.xpose.msk.msra.mxu1 %vm1038_vm1, %v683_v17  ;;  %v111_v28 = vld [vmem:[#allocation6 + $0x98] sm:$0xff]  ;;  %v691_v29 = vpack.c.bf16 %v97_v26, %v96_v25  ;;  %v98_v31 = vld [vmem:[#allocation6 + $0x30] sm:$0xff]  ;;  %v112_v33 = vld [vmem:[#allocation6 + $0xa0] sm:$0xff] }
  0x65   :  { %686 = vmatprep.subr.bf16.mxu1 %v907_v1  ;;  %v719_v30 = vpack.c.bf16 %v111_v28, %v110_v27  ;;  %v99_v32 = vld [vmem:[#allocation6 + $0x38] sm:$0xff]  ;;  %v113_v34 = vld [vmem:[#allocation6 + $0xa8] sm:$0xff]  ;;  %v100_v37 = vld [vmem:[#allocation6 + $0x40] sm:$0xff]  ;;  %p877_p1 = por %p876_p0, %p875_p13 }
  0x66   :  { %681 = vmatpush3.bf16.msra.mxu0 %v678_v9  ;;  %v695_v35 = vpack.c.bf16 %v99_v32, %v98_v31  ;;  %v723_v36 = vpack.c.bf16 %v113_v34, %v112_v33  ;;  %v101_v38 = vld [vmem:[#allocation6 + $0x48] sm:$0xff]  ;;  %v114_v39 = vld [vmem:[#allocation6 + $0xb0] sm:$0xff]  ;;  %v115_v40 = vld [vmem:[#allocation6 + $0xb8] sm:$0xff] }
  0x67   :  { %714 = vmatprep.subr.bf16.mxu0 %v907_v1  ;;  %v699_v41 = vpack.c.bf16 %v101_v38, %v100_v37  ;;  %v727_v42 = vpack.c.bf16 %v115_v40, %v114_v39  ;;  %v102_v43 = vld [vmem:[#allocation6 + $0x50] sm:$0xff]  ;;  %v103_v44 = vld [vmem:[#allocation6 + $0x58] sm:$0xff]  ;;  %v116_v45 = vld [vmem:[#allocation6 + $0xc0] sm:$0xff]  ;;  %p878_p2 = pnand %p877_p1, %p871_p12 }
  0x68   :  { %230 = vadd.xlane.f32.xlu0 %v229_v18  ;;  %v117_v46 = vld [vmem:[#allocation6 + $0xc8] sm:$0xff]  ;;  %v703_v47 = vpack.c.bf16 %v103_v44, %v102_v43  ;;  %v104_v49 = vld [vmem:[#allocation6 + $0x60] sm:$0xff]  ;;  %v118_v51 = vld [vmem:[#allocation6 + $0xd0] sm:$0xff] }
  0x69   :  { %602 = vmatmul.mubr.msk.f32.vlgmr.msra.gmra.mrb[0].mxu0 %vm135_vm0, %v91_v11  ;;  %v731_v48 = vpack.c.bf16 %v117_v46, %v116_v45  ;;  %v105_v50 = vld [vmem:[#allocation6 + $0x68] sm:$0xff]  ;;  %v119_v52 = vld [vmem:[#allocation6 + $0xd8] sm:$0xff]  ;;  %v106_v55 = vld [vmem:[#allocation6 + $0x70] sm:$0xff] }
  0x6a   :  { %v707_v53 = vpack.c.bf16 %v105_v50, %v104_v49  ;;  %v735_v54 = vpack.c.bf16 %v119_v52, %v118_v51  ;;  %v107_v56 = vld [vmem:[#allocation6 + $0x78] sm:$0xff]  ;;  %v120_v57 = vld [vmem:[#allocation6 + $0xe0] sm:$0xff]  ;;  %v121_v58 = vld [vmem:[#allocation6 + $0xe8] sm:$0xff]  ;;  %671 = vmatprep.mubr.msk.f32.mxu0 %vm908_vm2, %v909_v0 }
  0x6b   :  { %v711_v59 = vpack.c.bf16 %v107_v56, %v106_v55  ;;  %v739_v60 = vpack.c.bf16 %v121_v58, %v120_v57  ;;  %v122_v61 = vld [vmem:[#allocation6 + $0xf0] sm:$0xff]  ;;  %v123_v62 = vld [vmem:[#allocation6 + $0xf8] sm:$0xff]  ;;  %v518_v3 = vld [vmem:[#allocation2] ss:$0 sm:$0xff] }
  0x6c   :  { %689 = vmatpush3.bf16.xpose.msk.msra.mxu1 %vm1038_vm1, %v687_v23  ;;  %v743_v63 = vpack.c.bf16 %v123_v62, %v122_v61 }
  0x6d   :  { %690 = vmatprep.subr.bf16.mxu1 %v907_v1 }
  0x6f   :  { %717 = vmatpush3.bf16.xpose.msk.msra.mxu0 %vm1038_vm1, %v715_v24 }
  0x70   :  { %718 = vmatprep.subr.bf16.mxu0 %v907_v1 }
  0x74   :  { %693 = vmatpush3.bf16.xpose.msk.msra.mxu1 %vm1038_vm1, %v691_v29 }
  0x75   :  { %694 = vmatprep.subr.bf16.mxu1 %v907_v1 }
  0x77   :  { %721 = vmatpush3.bf16.xpose.msk.msra.mxu0 %vm1038_vm1, %v719_v30 }
  0x78   :  { %722 = vmatprep.subr.bf16.mxu0 %v907_v1 }
  0x7c   :  { %697 = vmatpush3.bf16.xpose.msk.msra.mxu1 %vm1038_vm1, %v695_v35 }
  0x7d   :  { %698 = vmatprep.subr.bf16.mxu1 %v907_v1 }
  0x7f   :  { %725 = vmatpush3.bf16.xpose.msk.msra.mxu0 %vm1038_vm1, %v723_v36 }
  0x80   :  { %726 = vmatprep.subr.bf16.mxu0 %v907_v1 }
  0x84   :  { %701 = vmatpush3.bf16.xpose.msk.msra.mxu1 %vm1038_vm1, %v699_v41 }
  0x85   :  { %702 = vmatprep.subr.bf16.mxu1 %v907_v1 }
  0x87   :  { %729 = vmatpush3.bf16.xpose.msk.msra.mxu0 %vm1038_vm1, %v727_v42 }
  0x88   :  { %730 = vmatprep.subr.bf16.mxu0 %v907_v1 }
  0x8c   :  { %705 = vmatpush3.bf16.xpose.msk.msra.mxu1 %vm1038_vm1, %v703_v47 }
  0x8d   :  { %706 = vmatprep.subr.bf16.mxu1 %v907_v1 }
  0x8f   :  { %733 = vmatpush3.bf16.xpose.msk.msra.mxu0 %vm1038_vm1, %v731_v48 }
  0x90   :  { %734 = vmatprep.subr.bf16.mxu0 %v907_v1 }
  0x94   :  { %709 = vmatpush3.bf16.xpose.msk.msra.mxu1 %vm1038_vm1, %v707_v53 }
  0x95   :  { %710 = vmatprep.subr.bf16.mxu1 %v907_v1 }
  0x97   :  { %737 = vmatpush3.bf16.xpose.msk.msra.mxu0 %vm1038_vm1, %v735_v54 }
  0x98   :  { %738 = vmatprep.subr.bf16.mxu0 %v907_v1 }
  0x9c   :  { %713 = vmatpush3.bf16.xpose.msk.msra.mxu1 %vm1038_vm1, %v711_v59 }
  0x9f   :  { %741 = vmatpush3.bf16.xpose.msk.msra.mxu0 %vm1038_vm1, %v739_v60 }
  0xa0   :  { %742 = vmatprep.subr.bf16.mxu0 %v907_v1  ;;  %v514_v1 = vld [vmem:[#allocation9] ss:$0 sm:$0xff] }
  0xa7   :  { %745 = vmatpush3.bf16.xpose.msk.msra.mxu0 %vm1038_vm1, %v743_v63 }
  0xf1   :  { %v228_v4 = vpop.xlane.xlu0 %227 }
  0xf2   :  { %v239_v5 = vadd.f32 %v518_v3, %v228_v4 }
  0xf4   :  { %243 = vperm.xlu1 %758, %v239_v5  }
  0xf5   :  { %v231_v6 = vpop.xlane.xlu0 %230 }
  0xf6   :  { %v240_v7 = vadd.f32 %v518_v3, %v231_v6 }
  0xf8   :  { %248 = vperm.xlu1 %758, %v240_v7  }
 0x13c   :  { %v603_v8 = vpop.f32.mrb[0].mxu0 }
 0x13d   :  { %v214_v9 = vadd.f32 %v603_v8, %v514_v1  ;;  %v208_v10 = vpop.f32.mrb[1].mxu0 }
 0x13e   :  { %v209_v11 = vadd.f32 %v514_v1, %v208_v10 }
 0x13f   :  { %672 = vmatmul.mubr.msk.f32.vlgmr.msra.gmra.mrb[2].mxu0 %vm135_vm0, %v214_v9 }
 0x140   :  { %637 = vmatmul.mubr.msk.f32.vlgmr.msra.gmra.mrb[0].mxu1 %vm135_vm0, %v209_v11 }
 0x173   :  { %v244_v12 = vpop.permute.xlu1 %243 }
 0x177   :  { %v249_v13 = vpop.permute.xlu1 %248 }
 0x212   :  { %v489_v14 = vpop.f32.mrb[2].mxu0 }
 0x213   :  { %v490_v15 = vadd.f32 %v489_v14, %v249_v13  ;;  %v368_v16 = vpop.f32.mrb[0].mxu1  ;;  %v673_v17 = vpop.f32.mrb[3].mxu0 }
 0x214   :  { %v369_v18 = vadd.f32 %v368_v16, %v244_v12  ;;  %v638_v19 = vpop.f32.mrb[1].mxu1 }
 0x215   :  { %494 = vst [vmem:[#allocation12 + $0x8] sm:$0xff] %v490_v15 }
 0x216   :  { %493 = vst [vmem:[#allocation12] sm:$0xff] %v369_v18 }
 0x217   :  { %881 = shalt.err (!%p878_p2)
}
 0x218   :  { %s882_s14 = scalar_lea.hbm %s1115_s6, 256 }
 0x219   :  { %p883_p3 = scmp.ne.s32.totalorder %s1115_s6, %s882_s14  ;;  %p886_p4 = scmp.lt.u32.totalorder %s882_s14, %s1115_s6 }
 0x21b   :  { %p888_p5 = pnand %p886_p4, %p883_p3 }
 0x21d   :  { %891 = shalt.err (!%p888_p5)
}
 0x21e   :  { %506 = dma.vmem_to_hbm [thread:$0]  %s501_s12, 256, %s1115_s6, [#allocation5], %s902_s10, %s902_s10, %s903_s11  }
 0x21f   :  { %898 = dma.done.wait [#allocation5], 256  }
 0x220   :  { %899 = vsyncadd [#allocation5], 4294967040 }
 0x221   :  { %510 = vsyncpa [#allocation4], 1 }
 0x222   :  { %511 = vsyncpa [#allocation7], 1 }
 0x223   :  { %512 = vsyncpa [#allocation10], 1 }
 0x224   :  { %513 = vsyncpa [#allocation5], 1 }

</bundles_post_ra>
